<compile_context>
chip_gen: v6e
topology: v6e:2x2x1
jax: 0.10.0
libtpu: 0.0.40
codegen_flags: <defaults>
</compile_context>

<pallas_src>
import functools

import jax
import jax.numpy as jnp
from jax.experimental import pallas as pl
from jax.experimental.pallas import tpu as pltpu


def _wce_kernel(pred_ref, true_ref, out_ref, *, hw, tiles_per_split, needs_mask):
    # pred_ref: (C, bn)  VMEM  logits tile (batch & split dims squeezed)
    # true_ref: (C, bn)  VMEM  target tile
    # out_ref:  (C, 1)   VMEM  per-(batch, split), per-channel partial sums
    #                          (resident across the reduction axis).
    s = pl.program_id(1)
    i = pl.program_id(2)
    bn = pred_ref.shape[1]

    @pl.when(i == 0)
    def _():
        out_ref[...] = jnp.zeros_like(out_ref)

    logits = pred_ref[...].astype(jnp.float32)       # (C, bn)
    targets = true_ref[...].astype(jnp.float32)      # (C, bn)

    # Numerically stable per-lane log-sum-exp over the channel (sublane) axis.
    m = jnp.max(logits, axis=0, keepdims=True)                              # (1, bn)
    lse = m + jnp.log(jnp.sum(jnp.exp(logits - m), axis=0, keepdims=True))  # (1, bn)

    # -t_c * log p_c = t_c * (lse - logit_c); class weights folded in later (JAX side).
    contrib = targets * (lse - logits)               # (C, bn)

    if needs_mask:
        global_tile = s * tiles_per_split + i
        is_tail = (global_tile + 1) * bn > hw

        @pl.when(jnp.logical_not(is_tail))
        def _():
            out_ref[...] += jnp.sum(contrib, axis=1, keepdims=True)

        @pl.when(is_tail)
        def _():
            lane = jax.lax.broadcasted_iota(jnp.int32, contrib.shape, 1)
            valid = (global_tile * bn + lane) < hw
            out_ref[...] += jnp.sum(jnp.where(valid, contrib, 0.0),
                                    axis=1, keepdims=True)
    else:
        out_ref[...] += jnp.sum(contrib, axis=1, keepdims=True)


def _sublane_padded_rows(c, dtype):
    # C sits on the sublane axis: f32 pads to ceil(C/8)*8, bf16 to /16, int8 to /32.
    packing = max(1, 4 // jnp.dtype(dtype).itemsize)
    rows = 8 * packing
    return pl.cdiv(c, rows) * rows


def weighted_cross_entropy_loss(y_pred, y_true, class_weights, *,
                                block_n=256 * 1024,
                                vmem_budget_bytes=26 * 1024 * 1024,
                                spatial_splits=None):
    """y_pred, y_true: (B, C, H, W) arrays (NCHW). Returns scalar f32 loss."""
    B, C, H, W = y_pred.shape
    HW = H * W
    N = B * HW

    # Free, contiguous reshape — no transpose, no dtype upcast in HBM.
    pred = y_pred.reshape(B, C, HW)
    true = y_true.reshape(B, C, HW)
    w = class_weights.astype(jnp.float32).reshape(C)

    # Per-lane VMEM footprint: 2 inputs x 2 pipeline buffers x padded channel rows.
    bytes_per_lane = 0
    for t in (y_pred, y_true):
        bytes_per_lane += (2 * _sublane_padded_rows(C, t.dtype)
                           * jnp.dtype(t.dtype).itemsize)
    bn_cap = max(128, (vmem_budget_bytes // bytes_per_lane) // 128 * 128)
    bn = max(128, min(block_n, bn_cap) // 128 * 128)

    # Spatial split so v7x's second TensorCore gets work when B is small;
    # S=1 (no-op) when the batch axis already feeds both cores / on v5e & v6e.
    if spatial_splits is None:
        spatial_splits = 2 if B == 1 else 1
    S = max(1, min(int(spatial_splits), pl.cdiv(HW, 128)))
    if S > 1:
        bn = min(bn, max(128, pl.cdiv(pl.cdiv(HW, S), 128) * 128))

    if HW <= bn and S == 1:
        bn = HW                      # full spatial extent in one block (always legal)
        n_tiles = 1
    else:
        n_tiles = pl.cdiv(HW, bn)    # bn multiple of 128; tail masked in-kernel
    tiles_per_split = pl.cdiv(n_tiles, S)
    needs_mask = (S * tiles_per_split * bn) != HW

    if S * tiles_per_split > n_tiles:
        # Virtual (fully out-of-range) tiles re-read the last real tile; the
        # in-kernel mask zeroes their contribution.
        def in_map(b, s, i):
            return (b, 0, jnp.minimum(s * tiles_per_split + i, n_tiles - 1))
    else:
        def in_map(b, s, i):
            return (b, 0, s * tiles_per_split + i)

    kernel = functools.partial(_wce_kernel, hw=HW,
                               tiles_per_split=tiles_per_split,
                               needs_mask=needs_mask)

    # Compiler VMEM limit matches what we actually budgeted (plus headroom for
    # the tiny (C,1) output blocks and internal scratch).
    actual_vmem = bytes_per_lane * bn + (1 << 20)
    vmem_limit = max(16 * 1024 * 1024,
                     min(100 * 1024 * 1024,
                         max(int(vmem_budget_bytes), actual_vmem) + (4 << 20)))

    # No Buffered(3): depth-2 pipelining + maximal bn is the right trade (esp. v7x).
    partials = pl.pallas_call(
        kernel,
        out_shape=jax.ShapeDtypeStruct((B, S, C, 1), jnp.float32),
        grid_spec=pltpu.PrefetchScalarGridSpec(
            num_scalar_prefetch=0,
            grid=(B, S, tiles_per_split),
            in_specs=[
                pl.BlockSpec((None, C, bn), in_map),     # logits tile
                pl.BlockSpec((None, C, bn), in_map),     # target tile
            ],
            out_specs=pl.BlockSpec((None, None, C, 1),
                                   lambda b, s, i: (b, s, 0, 0)),
        ),
        compiler_params=pltpu.CompilerParams(
            # batch & spatial-split axes parallel (v7x dual-TC); tile axis reduces.
            dimension_semantics=("parallel", "parallel", "arbitrary"),
            vmem_limit_bytes=vmem_limit,
        ),
    )(pred, true)

    # Tiny class weighting + mean normalization in JAX (B*S*C values).
    per_class = jnp.sum(partials, axis=(0, 1))[:, 0]        # (C,)
    return jnp.dot(per_class, w) * jnp.float32(1.0 / N)


def _reference_loss(y_pred, y_true, class_weights):
    p = jax.nn.softmax(y_pred.astype(jnp.float32), axis=1)
    loss = 0.0
    for c in range(y_pred.shape[1]):
        loss += class_weights[c] * jnp.mean(-y_true[:, c].astype(jnp.float32)
                                            * jnp.log(p[:, c]))
    return loss


if __name__ == "__main__":
    B, C, H, W = 2, 4, 16, 16
    key = jax.random.PRNGKey(0)
    k1, k2, k3, k4, k5, k6 = jax.random.split(key, 6)

    y_pred = jax.random.normal(k1, (B, C, H, W), dtype=jnp.float32)
    # soft targets (probabilities over channels), like the PyTorch module expects
    y_true = jax.nn.softmax(jax.random.normal(k2, (B, C, H, W), dtype=jnp.float32),
                            axis=1)
    class_weights = jnp.array([1.0, 2.0, 0.5, 1.5], dtype=jnp.float32)

    loss = weighted_cross_entropy_loss(y_pred, y_true, class_weights)
    loss = jax.block_until_ready(loss)
    ref = _reference_loss(y_pred, y_true, class_weights)
    assert jnp.allclose(loss, ref, rtol=1e-5, atol=1e-5), (loss, ref)

    # Multi-tile + masked-tail path (HW = 240, block_n = 128, no spatial split).
    H2, W2 = 12, 20
    y_pred2 = jax.random.normal(k3, (B, C, H2, W2), dtype=jnp.float32)
    y_true2 = jax.nn.softmax(jax.random.normal(k4, (B, C, H2, W2), dtype=jnp.float32),
                             axis=1)
    loss2 = weighted_cross_entropy_loss(y_pred2, y_true2, class_weights, block_n=128)
    loss2 = jax.block_until_ready(loss2)
    ref2 = _reference_loss(y_pred2, y_true2, class_weights)
    assert jnp.allclose(loss2, ref2, rtol=1e-5, atol=1e-5), (loss2, ref2)

    # B=1 path: auto spatial split (S=2) + masked tail, exercises the v7x split.
    y_pred3 = jax.random.normal(k5, (1, C, H2, W2), dtype=jnp.float32)
    y_true3 = jax.nn.softmax(jax.random.normal(k6, (1, C, H2, W2), dtype=jnp.float32),
                             axis=1)
    loss3 = weighted_cross_entropy_loss(y_pred3, y_true3, class_weights)
    loss3 = jax.block_until_ready(loss3)
    ref3 = _reference_loss(y_pred3, y_true3, class_weights)
    assert jnp.allclose(loss3, ref3, rtol=1e-5, atol=1e-5), (loss3, ref3)

    print("KERNEL_OK")
</pallas_src>

<mosaic_0001>
module attributes {stable_mosaic.version = 11 : i64} {
  func.func @_wce_kernel(%arg0: i32, %arg1: i32, %arg2: i32, %arg3: memref<1x4x256xf32, #tpu.memory_space<vmem>>, %arg4: memref<1x4x256xf32, #tpu.memory_space<vmem>>, %arg5: memref<1x1x4x1xf32, #tpu.memory_space<vmem>>) attributes {dimension_semantics = [#tpu.dimension_semantics<parallel>, #tpu.dimension_semantics<parallel>, #tpu.dimension_semantics<arbitrary>], iteration_bounds = array<i64: 2, 1, 1>, scalar_prefetch = 0 : i64, scratch_operands = 0 : i64, tpu.core_type = #tpu.core_type<tc>, window_params = [{transform_indices = @transform_0, window_bounds = array<i64: 1, 4, 256>}, {transform_indices = @transform_1, window_bounds = array<i64: 1, 4, 256>}, {transform_indices = @transform_2, window_bounds = array<i64: 1, 1, 4, 1>}]} {
    %c0_i32 = arith.constant 0 : i32
    %0 = arith.cmpi eq, %arg2, %c0_i32 : i32
    %1 = arith.extui %0 : i1 to i32
    %c0_i32_0 = arith.constant 0 : i32
    %2 = arith.cmpi ne, %1, %c0_i32_0 : i32
    scf.if %2 {
      %cst_16 = arith.constant 0.000000e+00 : f32
      %27 = vector.broadcast %cst_16 : f32 to vector<4x1xf32>
      %c0_17 = arith.constant 0 : index
      %c0_18 = arith.constant 0 : index
      %c0_19 = arith.constant 0 : index
      %c0_20 = arith.constant 0 : index
      %28 = vector.load %arg5[%c0_17, %c0_18, %c0_19, %c0_20] : memref<1x1x4x1xf32, #tpu.memory_space<vmem>>, vector<1x1x4x1xf32>
      %29 = vector.shape_cast %28 : vector<1x1x4x1xf32> to vector<4x1xf32>
      %30 = vector.shape_cast %27 : vector<4x1xf32> to vector<1x1x4x1xf32>
      tpu.vector_store %arg5[%c0_17, %c0_18, %c0_19, %c0_20], %30 {strides = array<i32>} : memref<1x1x4x1xf32, #tpu.memory_space<vmem>>, vector<1x1x4x1xf32>,
    } else {
    }
    %c0 = arith.constant 0 : index
    %c0_1 = arith.constant 0 : index
    %c0_2 = arith.constant 0 : index
    %3 = vector.load %arg3[%c0, %c0_1, %c0_2] : memref<1x4x256xf32, #tpu.memory_space<vmem>>, vector<1x4x256xf32>
    %4 = vector.shape_cast %3 : vector<1x4x256xf32> to vector<4x256xf32>
    %c0_3 = arith.constant 0 : index
    %c0_4 = arith.constant 0 : index
    %c0_5 = arith.constant 0 : index
    %5 = vector.load %arg4[%c0_3, %c0_4, %c0_5] : memref<1x4x256xf32, #tpu.memory_space<vmem>>, vector<1x4x256xf32>
    %6 = vector.shape_cast %5 : vector<1x4x256xf32> to vector<4x256xf32>
    %cst = arith.constant dense<0xFF800000> : vector<256xf32>
    %7 = vector.multi_reduction <maximumf>, %4, %cst [0] : vector<4x256xf32> to vector<256xf32>
    %8 = vector.shape_cast %7 : vector<256xf32> to vector<1x256xf32>
    %9 = vector.broadcast %8 : vector<1x256xf32> to vector<4x256xf32>
    %10 = arith.subf %4, %9 : vector<4x256xf32>
    %11 = math.exp %10 : vector<4x256xf32>
    %cst_6 = arith.constant dense<0.000000e+00> : vector<256xf32>
    %12 = vector.multi_reduction <add>, %11, %cst_6 [0] : vector<4x256xf32> to vector<256xf32>
    %13 = vector.shape_cast %12 : vector<256xf32> to vector<1x256xf32>
    %14 = math.log %13 : vector<1x256xf32>
    %15 = arith.addf %8, %14 : vector<1x256xf32>
    %16 = vector.broadcast %15 : vector<1x256xf32> to vector<4x256xf32>
    %17 = arith.subf %16, %4 : vector<4x256xf32>
    %18 = arith.mulf %6, %17 : vector<4x256xf32>
    %c0_7 = arith.constant 0 : index
    %c0_8 = arith.constant 0 : index
    %c0_9 = arith.constant 0 : index
    %c0_10 = arith.constant 0 : index
    %19 = vector.load %arg5[%c0_7, %c0_8, %c0_9, %c0_10] : memref<1x1x4x1xf32, #tpu.memory_space<vmem>>, vector<1x1x4x1xf32>
    %20 = vector.shape_cast %19 : vector<1x1x4x1xf32> to vector<4x1xf32>
    %cst_11 = arith.constant dense<0.000000e+00> : vector<4xf32>
    %21 = vector.multi_reduction <add>, %18, %cst_11 [1] : vector<4x256xf32> to vector<4xf32>
    %22 = vector.shape_cast %21 : vector<4xf32> to vector<4x1xf32>
    %23 = arith.addf %20, %22 : vector<4x1xf32>
    %c0_12 = arith.constant 0 : index
    %c0_13 = arith.constant 0 : index
    %c0_14 = arith.constant 0 : index
    %c0_15 = arith.constant 0 : index
    %24 = vector.load %arg5[%c0_12, %c0_13, %c0_14, %c0_15] : memref<1x1x4x1xf32, #tpu.memory_space<vmem>>, vector<1x1x4x1xf32>
    %25 = vector.shape_cast %24 : vector<1x1x4x1xf32> to vector<4x1xf32>
    %26 = vector.shape_cast %23 : vector<4x1xf32> to vector<1x1x4x1xf32>
    tpu.vector_store %arg5[%c0_12, %c0_13, %c0_14, %c0_15], %26 {strides = array<i32>} : memref<1x1x4x1xf32, #tpu.memory_space<vmem>>, vector<1x1x4x1xf32>,
    return
  }
  func.func @transform_0(%arg0: i32, %arg1: i32, %arg2: i32) -> (i32, i32, i32) {
    %c1_i32 = arith.constant 1 : i32
    %0 = arith.muli %arg1, %c1_i32 : i32
    %1 = arith.addi %0, %arg2 : i32
    %c0_i32 = arith.constant 0 : i32
    %c0_i32_0 = arith.constant 0 : i32
    return %arg0, %c0_i32, %1 : i32, i32, i32
  }
  func.func @transform_1(%arg0: i32, %arg1: i32, %arg2: i32) -> (i32, i32, i32) {
    %c1_i32 = arith.constant 1 : i32
    %0 = arith.muli %arg1, %c1_i32 : i32
    %1 = arith.addi %0, %arg2 : i32
    %c0_i32 = arith.constant 0 : i32
    %c0_i32_0 = arith.constant 0 : i32
    return %arg0, %c0_i32, %1 : i32, i32, i32
  }
  func.func @transform_2(%arg0: i32, %arg1: i32, %arg2: i32) -> (i32, i32, i32, i32) {
    %c0_i32 = arith.constant 0 : i32
    %c0_i32_0 = arith.constant 0 : i32
    %c0_i32_1 = arith.constant 0 : i32
    return %arg0, %arg1, %c0_i32, %c0_i32_0 : i32, i32, i32, i32
  }
}

</mosaic_0001>

<bundles_post_ra>
// kernel: tpu_custom_call.1
= control target key start
LH: loop header
LB: loop body
LE: loop exit
PB: predicated region body
PF: predicated region fallthrough
CT: control target
= control target key end

     0   :  { %7 = vsyncpa [#allocation3], 0  ;;  %s793_s0 = inlined_call_operand.hbm [shape: f32[2,4,256], index: 0, kind: input, shape index: {}]   ;;  %s794_s1 = inlined_call_operand.hbm [shape: f32[2,4,256], index: 1, kind: input, shape index: {}]   ;;  %s795_s2 = inlined_call_operand.vmem [shape: f32[2,1,4,1], index: 2, kind: output, shape index: {}]  }
   0x1   :  { %9 = vsyncpa [#allocation3 + $0x1], 0 }
   0x2   :  { %10 = vsyncpa [#allocation5], 0 }
   0x3   :  { %12 = vsyncpa [#allocation5 + $0x1], 0  ;;  %s651_s9 = smov 0   ;;  %s653_s10 = smov 0  }
   0x4   :  { %s655_s11 = smov 0   ;;  %s657_s12 = smov 0  }
   0x5   :  { %s659_s13 = smov 0   ;;  %s661_s14 = smov 0  }
   0x6 LB: > { %s435_s15 = sadd.s32 4294967295, %s631_s14   ;;  %s37_s16 = sadd.s32 1, %s627_s13  ;;  %s631_s14 = sphi %s661_s14, %s18_s14   ;;  %s627_s13 = sphi %s659_s13, %s804_s13   ;;  %s623_s12 = sphi %s657_s12, %s803_s12   ;;  %s619_s11 = sphi %s655_s11, %s802_s11   ;;  %s615_s10 = sphi %s653_s10, %s801_s10   ;;  %s611_s9 = sphi %s651_s9, %s800_s9  }
   0x7   : > { %p39_p0 = scmp.ge.s32.totalorder %s37_s16, 2  ;;  %s48_s17 = sadd.s32 1, %s619_s11 }
   0x8   : > { %p55_p1 = scmp.ne.s32.totalorder %s619_s11, %s615_s10  ;;  %p56_p2 = scmp.eq.s32.totalorder %s631_s14, 0 }
   0x9   : > { %s806_s16 = smov (%p39_p0, %s37_s16), 0  ;;  %p61_p4 = scmp.ne.s32.totalorder %s615_s10, %s611_s9 }
   0xa   : > { %p687_p3 = por %p56_p2, %p55_p1  ;;  %s43_s19 = ssub.s32 %s627_s13, %s806_s16 }
   0xb   : > { %p62_p5 = scmp.eq.s32.totalorder %s435_s15, 0  ;;  %p46_p6 = scmp.eq.s32.totalorder %s43_s19, 0 }
   0xc   : > { %p464_p8 = scmp.lt.s32.totalorder %s631_s14, 2  ;;  %s703_s22 = sand.u32 1, %s619_s11  }
   0xd   : > { %p694_p7 = por %p62_p5, %p61_p4  ;;  %s451_s23 = sshll.u32 %s627_s13, 7 }
   0xe   : > { %s700_s21 = scalar_select %p46_p6, %s619_s11, %s48_s17  }
   0xf   : > { %s439_s24 = sshll.u32 %s703_s22, 3  ;;  %s156_s27 = scalar_lea.hbm %s793_s0, %s451_s23 }
  0x10   : > { %s147_s28 = scalar_lea.vmem [#allocation2], %s439_s24  ;;  %p712_p9 = pnand %p464_p8, %p687_p3 }
  0x11   : > { %s158_s29 = sshll.u32 %s147_s28, 4  ;;  %p445_p10 = scmp.ge.s32.totalorder %s631_s14, 1  ;;  %s159_s29 = int_to_ptr.vmem [resolvable:$true] %s158_s29 }
  0x12   : > { %p185_p11 = scmp.lt.s32.totalorder %s631_s14, 3  ;;  %s144_s3 = scalar_lea.sflag [#allocation3], %s703_s22 }
  0x13   : > { %p523_p12 = pneg %p712_p9  ;;  %s534_s4 = scalar_lea.vmem %s159_s29, 128 }
  0x14   : > { %p535_p13 = scmp.ne.s32.totalorder %s159_s29, %s534_s4  ;;  %s633_s5 = smov [#allocation2]  }
  0x15   : > { %s539_s6 = sshll.u32 %s633_s5, 4  ;;  %s540_s6 = int_to_ptr.vmem [resolvable:$false] %s539_s6 }
  0x16   : > { %p537_p0 = pnand %p535_p13, %p523_p12  ;;  %s541_s7 = scalar_lea.vmem %s540_s6, 256 }
  0x17   : > { %p542_p2 = scmp.lt.s32.totalorder %s159_s29, %s540_s6  ;;  %p543_p3 = scmp.lt.s32.totalorder %s541_s7, %s534_s4 }
  0x18   : > { %p538_p1 = pneg %p537_p0 }
  0x19   : > { %p544_p4 = por %p543_p3, %p542_p2 }
  0x1b   : > { %p545_p5 = pnand %p544_p4, %p538_p1 }
  0x1d   : > { %548 = shalt.err (!%p545_p5)
}
  0x1e   : > { %460 = dma.hbm_to_vmem [thread:$0]  (!%p712_p9), %s156_s27, 128, %s159_s29, %s144_s3  }
  0x1f   : > { %p730_p6 = pnand %p445_p10, %p185_p11  ;;  %s178_s17 = scalar_lea.hbm %s794_s1, %s451_s23 }
  0x20   : > { %s169_s18 = scalar_lea.vmem [#allocation4], %s439_s24  ;;  %s166_s25 = scalar_lea.sflag [#allocation5], %s703_s22 }
  0x21   : > { %s180_s19 = sshll.u32 %s169_s18, 4  ;;  %s634_s27 = smov [#allocation4]   ;;  %s181_s19 = int_to_ptr.vmem [resolvable:$true] %s180_s19 }
  0x22   : > { %s562_s26 = scalar_lea.vmem %s181_s19, 128  ;;  %s567_s28 = sshll.u32 %s634_s27, 4  ;;  %s568_s28 = int_to_ptr.vmem [resolvable:$false] %s567_s28 }
  0x23   : > { %p563_p8 = scmp.ne.s32.totalorder %s181_s19, %s562_s26  ;;  %s569_s29 = scalar_lea.vmem %s568_s28, 256 }
  0x24   : > { %p570_p10 = scmp.lt.s32.totalorder %s181_s19, %s568_s28  ;;  %p571_p11 = scmp.lt.s32.totalorder %s569_s29, %s562_s26 }
  0x25   : > { %p565_p13 = pnand %p563_p8, %p523_p12 }
  0x26   : > { %p572_p1 = por %p571_p11, %p570_p10 }
  0x27   : > { %p566_p0 = pneg %p565_p13 }
  0x29   : > { %p573_p2 = pnand %p572_p1, %p566_p0 }
  0x2b   : > { %576 = shalt.err (!%p573_p2)
}
  0x2c   : > { %463 = dma.hbm_to_vmem [thread:$0]  (!%p712_p9), %s178_s17, 128, %s181_s19, %s166_s25  }
  0x2d   : > { %189 = sbr.rel (%p730_p6) target bundleno = 274 (0x112), region = 28  ;;  %s191_s22 = sand.u32 (!%p730_p6), 1, %s615_s10  }
  0x2e   : > { %s446_s23 = sshll.u32 (!%p730_p6), %s191_s22, 3  ;;  %s192_s24 = scalar_lea.sflag (!%p730_p6), [#allocation3], %s191_s22 }
  0x2f   : > { %s195_s3 = scalar_lea.vmem (!%p730_p6), [#allocation2], %s446_s23 }
  0x32   : > { %602 = dma.done.wait (%p694_p7), %s192_s24, 128  }
  0x33   : > { %604 = vsyncadd (%p694_p7), %s192_s24, 4294967168  ;;  %s201_s4 = scalar_lea.sflag [#allocation5], %s191_s22  ;;  %s750_s5 = scalar_lea.vmem [#allocation4], %s446_s23 }
  0x34   : > { %606 = dma.done.wait (%p694_p7), %s201_s4, 128  }
  0x35   : > { %608 = vsyncadd (%p694_p7), %s201_s4, 4294967168  ;;  %p236_p9 = scmp.lt.s32.totalorder %s623_s12, 1  ;;  %vm247_vm0 = vcmask 3072   ;;  %vm254_vm1 = vcmask 1043456   ;;  %v635_v0 = vmov 0.0   ;;  %v249_v1 = vld [vmem:[%s195_s3] sm:$0xff] }
  0x36   : > { %v252_v2 = vcombine.high %v249_v1, %v249_v1  ;;  %v255_v3 = vsel %vm254_vm1, %v249_v1, -inf  ;;  %v250_v44 = vld [vmem:[%s750_s5] sm:$0xff] }
  0x37   : > { %s808_s12 = smov (!%p236_p9, %s623_s12), 1  ;;  %v256_v4 = vrot.slane %v255_v3, 4 }
  0x38   : > { %s448_s30 = sshll.u32 %s808_s12, 2  ;;  %v262_v5 = vsel %vm254_vm1, %v252_v2, -inf }
  0x39   : > { %s761_s8 = scalar_lea.vmem %s795_s2, %s448_s30  ;;  %v257_v6 = vmax.f32 %v255_v3, %v256_v4  ;;  %v263_v7 = vrot.slane %v262_v5, 4 }
  0x3a   : > { %248 = vst.msk [vmem:[%s761_s8] sm:$0xf] %vm247_vm0, %v635_v0 }
  0x3b   : > { %v258_v8 = vrot.slane %v257_v6, 2  ;;  %v264_v9 = vmax.f32 %v262_v5, %v263_v7 }
  0x3d   : > { %v259_v10 = vmax.f32 %v257_v6, %v258_v8  ;;  %v265_v11 = vrot.slane %v264_v9, 2 }
  0x3f   : > { %v260_v12 = vrot.slane %v259_v10, 1  ;;  %v266_v13 = vmax.f32 %v264_v9, %v265_v11 }
  0x41   : > { %v261_v14 = vmax.f32 %v259_v10, %v260_v12  ;;  %v267_v15 = vrot.slane %v266_v13, 1  ;;  %v306_v51 = vld [vmem:[%s761_s8] sm:$0xf] }
  0x43   : > { %v268_v16 = vmax.f32 %v266_v13, %v267_v15 }
  0x45   : > { %v271_v17 = vcombine.low %v261_v14, %v268_v16 }
  0x47   : > { %v273_v18 = vsub.f32 %v249_v1, %v271_v17 }
  0x49   : > { %v274_v19 = vmul.f32 1.442695, %v273_v18 }
  0x4b   : > { %515 = vpow2.f32 %v274_v19 }
  0x58   : > { %v516_v20 = vpop.eup %515 }
  0x59   : > { %v277_v21 = vcombine.high %v516_v20, %v516_v20  ;;  %v279_v22 = vsel %vm254_vm1, %v516_v20, 0.0 }
  0x5a   : > { %v280_v23 = vrot.slane %v279_v22, 4 }
  0x5b   : > { %v286_v24 = vsel %vm254_vm1, %v277_v21, 0.0 }
  0x5c   : > { %v281_v25 = vadd.f32 %v280_v23, %v279_v22  ;;  %v287_v26 = vrot.slane %v286_v24, 4 }
  0x5e   : > { %v282_v27 = vrot.slane %v281_v25, 2  ;;  %v288_v28 = vadd.f32 %v287_v26, %v286_v24 }
  0x60   : > { %v283_v29 = vadd.f32 %v282_v27, %v281_v25  ;;  %v289_v30 = vrot.slane %v288_v28, 2 }
  0x62   : > { %v284_v31 = vrot.slane %v283_v29, 1  ;;  %v290_v32 = vadd.f32 %v289_v30, %v288_v28 }
  0x64   : > { %v285_v33 = vadd.f32 %v284_v31, %v283_v29  ;;  %v291_v34 = vrot.slane %v290_v32, 1 }
  0x66   : > { %v292_v35 = vadd.f32 %v291_v34, %v290_v32  ;;  %517 = vlog2.f32 %v285_v33 }
  0x68   : > { %519 = vlog2.f32 %v292_v35 }
  0x73   : > { %v518_v36 = vpop.eup %517 }
  0x74   : > { %v294_v37 = vmul.f32 0.6931472, %v518_v36 }
  0x75   : > { %v520_v38 = vpop.eup %519 }
  0x76   : > { %v296_v39 = vmul.f32 0.6931472, %v520_v38  ;;  %v297_v40 = vadd.f32 %v294_v37, %v261_v14 }
  0x78   : > { %v298_v41 = vadd.f32 %v296_v39, %v268_v16  ;;  %v299_v42 = vsub.f32 %v297_v40, %v249_v1 }
  0x7a   : > { %v300_v43 = vsub.f32 %v298_v41, %v252_v2 }
  0x7c   : > { %v303_v45 = vcombine.low %v299_v42, %v300_v43 }
  0x7e   : > { %v305_v46 = vmul.f32 %v303_v45, %v250_v44 }
  0x80   : > { %v308_v47 = vcombine.high %v305_v46, %v305_v46  ;;  %v310_v48 = vsel %vm254_vm1, %v305_v46, 0.0 }
  0x82   : > { %v311_v49 = vsel %vm254_vm1, %v308_v47, 0.0 }
  0x83   : > { %v312_v50 = vadd.f32 %v311_v49, %v310_v48 }
  0x85   : > { %313 = vadd.xlane.f32.xlu0 %v312_v50 }
 0x10e   : > { %v314_v52 = vpop.xlane.xlu0 %313 }
 0x10f   : > { %v315_v53 = vadd.f32 %v314_v52, %v306_v51 }
 0x111   : > { %317 = vst.msk [vmem:[%s761_s8] sm:$0xf] %vm247_vm0, %v315_v53 }
 0x112 PF: > { %s18_s14 = sadd.s32 1, %s631_s14   ;;  %s800_s9 = smov %s615_s10 }
 0x113   : > { %p15_p7 = scmp.ge.s32.totalorder %s18_s14, 4   ;;  %s801_s10 = smov %s619_s11 }
 0x114   : > { %s802_s11 = smov %s700_s21  ;;  %s803_s12 = smov %s627_s13 }
 0x115   : > { %s804_s13 = smov %s806_s16  ;;  %17 = sbr.rel (!%p15_p7) target bundleno = 6 (0x6), region = 85 }
 0x11a   :  { %343 = vsyncpa [#allocation3], 1 }
 0x11b   :  { %345 = vsyncpa [#allocation3 + $0x1], 1 }
 0x11c   :  { %346 = vsyncpa [#allocation5], 1 }
 0x11d   :  { %348 = vsyncpa [#allocation5 + $0x1], 1 }

</bundles_post_ra>
